<compile_context>
chip_gen: v6e
topology: v6e:2x2x1
jax: 0.10.0
libtpu: 0.0.40
codegen_flags: <defaults>
</compile_context>

<pallas_src>
import jax
import jax.numpy as jnp
from jax.experimental import pallas as pl
from jax.experimental.pallas import tpu as pltpu

LANE = 128  # TPU lane width: channel dims are padded to a multiple of this


def _round_up(n, m):
    return ((n + m - 1) // m) * m


def _pad_axis(a, target, axis):
    pad = target - a.shape[axis]
    if pad <= 0:
        return a
    widths = [(0, 0)] * a.ndim
    widths[axis] = (0, pad)
    return jnp.pad(a, widths)


def _nbytes(a):
    return a.size * a.dtype.itemsize


# --------------------------------------------------------------------------- #
# Fused kernel: conv1 -> ReLU -> conv2 -> ReLU -> conv3, all in VMEM.
# --------------------------------------------------------------------------- #
def _fused_dgcnn_kernel(l_ref, x_ref, w1_ref, b1_ref, w2_ref, b2_ref,
                        w3_ref, b3_ref, o_ref):
    L = l_ref[...]                                    # [Np, Np] bf16, loaded once

    def cheb_layer(h_f32, w_ref, b_ref, relu):
        # h_f32: [Np, Cin_pad] f32 ; w_ref: [3, Cin_pad, Cout_pad] bf16
        t0 = h_f32.astype(jnp.bfloat16)
        t1_f = jnp.dot(L, t0, preferred_element_type=jnp.float32)              # L@T0
        t1 = t1_f.astype(jnp.bfloat16)
        t2_f = 2.0 * jnp.dot(L, t1, preferred_element_type=jnp.float32) - h_f32  # 2L@T1-T0
        t2 = t2_f.astype(jnp.bfloat16)
        # Three ref-sliced dots accumulated in f32 (no concatenate / VMEM copy).
        out = (jnp.dot(t0, w_ref[0], preferred_element_type=jnp.float32)
               + jnp.dot(t1, w_ref[1], preferred_element_type=jnp.float32)
               + jnp.dot(t2, w_ref[2], preferred_element_type=jnp.float32))
        out = out + b_ref[...]                        # [1, Cout_pad] broadcasts
        if relu:
            out = jnp.maximum(out, 0.0)
        return out

    h = x_ref[...].astype(jnp.float32)                # bf16 input -> f32 working copy
    h = cheb_layer(h, w1_ref, b1_ref, relu=True)
    h = cheb_layer(h, w2_ref, b2_ref, relu=True)
    h = cheb_layer(h, w3_ref, b3_ref, relu=False)
    o_ref[...] = h.astype(o_ref.dtype)


# --------------------------------------------------------------------------- #
# Host-side glue.
# --------------------------------------------------------------------------- #
def scaled_laplacian_padded_bf16(edge_index, num_nodes, n_pad):
    """Padded dense L_hat = -D^{-1/2} A D^{-1/2}, built directly at (n_pad,n_pad)
    with the bf16 cast fused (PyG ChebConv default, lambda_max=2)."""
    src, dst = edge_index[0], edge_index[1]
    w = (src != dst).astype(jnp.float32)              # remove self-loops
    A = jnp.zeros((n_pad, n_pad), jnp.float32).at[dst, src].add(w)
    deg = A.sum(axis=1)
    dinv = jnp.where(deg > 0, 1.0 / jnp.sqrt(jnp.maximum(deg, 1e-12)), 0.0)
    # Padded rows/cols have deg == 0 -> dinv == 0 -> rows/cols stay exactly 0.
    return (-(dinv[:, None] * A * dinv[None, :])).astype(jnp.bfloat16)


def _pad_weight(w):
    """[3, Cin, Cout] -> [3, Cin_pad, Cout_pad] bf16."""
    cin_p = _round_up(w.shape[1], LANE)
    cout_p = _round_up(w.shape[2], LANE)
    w = _pad_axis(_pad_axis(w, cin_p, 1), cout_p, 2)
    return w.astype(jnp.bfloat16)


def _pad_bias(b):
    cout_p = _round_up(b.shape[0], LANE)
    return _pad_axis(b, cout_p, 0).reshape(1, cout_p).astype(jnp.float32)


def _node_pad(n):
    # bf16 sublane packing wants multiples of 16; lane/MXU-align for larger N.
    if n >= LANE:
        return _round_up(n, LANE)
    return _round_up(n, 16)


def _vmem_limit_bytes(residency_bytes):
    """Generation-aware VMEM limit: real residency + headroom, capped below
    the chip's physical VMEM (64 MiB on v7x, 128 MiB on v5e/v6e)."""
    try:
        cap = int(pltpu.get_tpu_info().vmem_capacity_bytes)
    except Exception:
        cap = 64 * 1024 * 1024                        # conservative (v7x-sized)
    want = int(residency_bytes * 1.5) + (4 << 20)     # headroom for compiler temps
    return int(min(max(want, 16 << 20), int(0.85 * cap)))


def init_params(key, in_channels, out_channels):
    dims = [(in_channels, 64), (64, 128), (128, out_channels)]
    params = {}
    for i, (cin, cout) in enumerate(dims, start=1):
        key, sub = jax.random.split(key)
        scale = jnp.sqrt(2.0 / (cin + cout))          # glorot-style, deterministic
        params[f"W{i}"] = scale * jax.random.normal(sub, (3, cin, cout), jnp.float32)
        params[f"b{i}"] = jnp.zeros((cout,), jnp.float32)
    return params


def dgcnn_encoder(params, x, edge_index, batch):
    # `batch` is unused by the reference forward (no pooling) -- kept for parity.
    del batch
    n = x.shape[0]
    c_out = params["W3"].shape[-1]
    n_pad = _node_pad(n)

    # Dense scaled Laplacian, built padded + bf16 in one fused expression.
    L = scaled_laplacian_padded_bf16(edge_index, n, n_pad)

    # Lane-pad features; pass to kernel as bf16 (zero padding is exact).
    xp = _pad_axis(_pad_axis(x, n_pad, 0), _round_up(x.shape[1], LANE), 1)
    xp = xp.astype(jnp.bfloat16)

    w1, b1 = _pad_weight(params["W1"]), _pad_bias(params["b1"])
    w2, b2 = _pad_weight(params["W2"]), _pad_bias(params["b2"])
    w3, b3 = _pad_weight(params["W3"]), _pad_bias(params["b3"])

    c0 = xp.shape[1]
    c1, c2, c3 = w1.shape[2], w2.shape[2], w3.shape[2]
    cins = (c0, c1, c2)            # input width of each layer (padded)
    couts = (c1, c2, c3)           # output width of each layer (padded)
    out_shape = jax.ShapeDtypeStruct((n_pad, c3), jnp.float32)

    # 2 propagation matmuls + 3 per-order feature matmuls per layer.
    flops = 0
    for ci, co in zip(cins, couts):
        flops += 2 * (2 * n_pad * n_pad * ci)          # L@T0, L@T1
        flops += 2 * n_pad * (3 * ci) * co             # T{0,1,2} @ W{0,1,2}
    operand_bytes = (_nbytes(L) + _nbytes(xp)
                     + sum(_nbytes(a) for a in (w1, b1, w2, b2, w3, b3))
                     + n_pad * c3 * 4)
    # Rough in-kernel activation residency (f32 h + bf16 t0/t1/t2 at widest layer).
    act_bytes = n_pad * max(c0, c1, c2, c3) * (2 * 4 + 3 * 2)
    vmem_limit = _vmem_limit_bytes(operand_bytes + act_bytes)

    out = pl.pallas_call(
        _fused_dgcnn_kernel,
        out_shape=out_shape,
        in_specs=[pl.BlockSpec(memory_space=pltpu.MemorySpace.VMEM)] * 8,
        out_specs=pl.BlockSpec(memory_space=pltpu.MemorySpace.VMEM),
        cost_estimate=pl.CostEstimate(flops=flops, transcendentals=0,
                                      bytes_accessed=operand_bytes),
        compiler_params=pltpu.CompilerParams(vmem_limit_bytes=vmem_limit),
    )(L, xp, w1, b1, w2, b2, w3, b3)

    return out[:n, :c_out]


if __name__ == "__main__":
    key = jax.random.PRNGKey(0)
    in_channels, out_channels = 4, 32
    num_nodes = 16

    k_param, k_x = jax.random.split(key)
    params = init_params(k_param, in_channels, out_channels)

    # Node features [N, C_in]
    x = jax.random.normal(k_x, (num_nodes, in_channels), jnp.float32)

    # Ring graph, both directions -> edge_index [2, 2N]
    idx = jnp.arange(num_nodes, dtype=jnp.int32)
    nxt = (idx + 1) % num_nodes
    edge_index = jnp.stack(
        [jnp.concatenate([idx, nxt]), jnp.concatenate([nxt, idx])], axis=0)

    # Single-graph batch vector (unused by forward)
    batch = jnp.zeros((num_nodes,), jnp.int32)

    out = jax.jit(dgcnn_encoder)(params, x, edge_index, batch)
    jax.block_until_ready(out)
    assert out.shape == (num_nodes, out_channels)
    assert jnp.all(jnp.isfinite(out))
    print("KERNEL_OK")
</pallas_src>

<mosaic_0001>
module attributes {stable_mosaic.version = 11 : i64} {
  func.func private @main(%arg0: i32) attributes {dimension_semantics = [#tpu.dimension_semantics<core_parallel>], iteration_bounds = array<i64: 2>, tpu.core_type = #tpu.core_type<sc_scalar_subcore>, window_params = []} {
    return
  }
}

module attributes {stable_mosaic.version = 11 : i64} {
  func.func private @main(%arg0: i32) attributes {dimension_semantics = [#tpu.dimension_semantics<core_parallel>], iteration_bounds = array<i64: 2>, tpu.core_type = #tpu.core_type<sc_scalar_subcore>, window_params = []} {
    return
  }
}

module attributes {stable_mosaic.version = 11 : i64} {
  func.func @_fused_dgcnn_kernel(%arg0: memref<16x16xbf16, #tpu.memory_space<vmem>>, %arg1: memref<16x128xbf16, #tpu.memory_space<vmem>>, %arg2: memref<3x128x128xbf16, #tpu.memory_space<vmem>>, %arg3: memref<1x128xf32, #tpu.memory_space<vmem>>, %arg4: memref<3x128x128xbf16, #tpu.memory_space<vmem>>, %arg5: memref<1x128xf32, #tpu.memory_space<vmem>>, %arg6: memref<3x128x128xbf16, #tpu.memory_space<vmem>>, %arg7: memref<1x128xf32, #tpu.memory_space<vmem>>, %arg8: memref<16x128xf32, #tpu.memory_space<vmem>>) attributes {dimension_semantics = [], scalar_prefetch = 0 : i64, scratch_operands = 0 : i64, tpu.core_type = #tpu.core_type<tc>} {
    %c0 = arith.constant 0 : index
    %c0_0 = arith.constant 0 : index
    %0 = vector.load %arg0[%c0, %c0_0] : memref<16x16xbf16, #tpu.memory_space<vmem>>, vector<16x16xbf16>
    %c0_1 = arith.constant 0 : index
    %c0_2 = arith.constant 0 : index
    %1 = vector.load %arg1[%c0_1, %c0_2] : memref<16x128xbf16, #tpu.memory_space<vmem>>, vector<16x128xbf16>
    %2 = arith.extf %1 : vector<16x128xbf16> to vector<16x128xf32>
    %3 = arith.truncf %2 : vector<16x128xf32> to vector<16x128xbf16>
    %cst = arith.constant dense<0.000000e+00> : vector<16x128xf32>
    %4 = tpu.matmul %0, %3, %cst {dimension_numbers = #tpu.dot_dimension_numbers<[1], [0], [0], [1], [0, 0, 1, 1], [], []>} : vector<16x16xbf16>, vector<16x128xbf16>, vector<16x128xf32> -> vector<16x128xf32>
    %5 = arith.truncf %4 : vector<16x128xf32> to vector<16x128xbf16>
    %cst_3 = arith.constant dense<0.000000e+00> : vector<16x128xf32>
    %6 = tpu.matmul %0, %5, %cst_3 {dimension_numbers = #tpu.dot_dimension_numbers<[1], [0], [0], [1], [0, 0, 1, 1], [], []>} : vector<16x16xbf16>, vector<16x128xbf16>, vector<16x128xf32> -> vector<16x128xf32>
    %cst_4 = arith.constant 2.000000e+00 : f32
    %7 = vector.broadcast %cst_4 : f32 to vector<16x128xf32>
    %8 = arith.mulf %7, %6 : vector<16x128xf32>
    %9 = arith.subf %8, %2 : vector<16x128xf32>
    %10 = arith.truncf %9 : vector<16x128xf32> to vector<16x128xbf16>
    %c0_5 = arith.constant 0 : index
    %c0_6 = arith.constant 0 : index
    %c0_7 = arith.constant 0 : index
    %11 = vector.load %arg2[%c0_5, %c0_6, %c0_7] : memref<3x128x128xbf16, #tpu.memory_space<vmem>>, vector<1x128x128xbf16>
    %12 = vector.shape_cast %11 : vector<1x128x128xbf16> to vector<128x128xbf16>
    %cst_8 = arith.constant dense<0.000000e+00> : vector<16x128xf32>
    %13 = tpu.matmul %3, %12, %cst_8 {dimension_numbers = #tpu.dot_dimension_numbers<[1], [0], [0], [1], [0, 0, 1, 1], [], []>} : vector<16x128xbf16>, vector<128x128xbf16>, vector<16x128xf32> -> vector<16x128xf32>
    %c1 = arith.constant 1 : index
    %c0_9 = arith.constant 0 : index
    %c0_10 = arith.constant 0 : index
    %14 = vector.load %arg2[%c1, %c0_9, %c0_10] : memref<3x128x128xbf16, #tpu.memory_space<vmem>>, vector<1x128x128xbf16>
    %15 = vector.shape_cast %14 : vector<1x128x128xbf16> to vector<128x128xbf16>
    %cst_11 = arith.constant dense<0.000000e+00> : vector<16x128xf32>
    %16 = tpu.matmul %5, %15, %cst_11 {dimension_numbers = #tpu.dot_dimension_numbers<[1], [0], [0], [1], [0, 0, 1, 1], [], []>} : vector<16x128xbf16>, vector<128x128xbf16>, vector<16x128xf32> -> vector<16x128xf32>
    %17 = arith.addf %13, %16 : vector<16x128xf32>
    %c2 = arith.constant 2 : index
    %c0_12 = arith.constant 0 : index
    %c0_13 = arith.constant 0 : index
    %18 = vector.load %arg2[%c2, %c0_12, %c0_13] : memref<3x128x128xbf16, #tpu.memory_space<vmem>>, vector<1x128x128xbf16>
    %19 = vector.shape_cast %18 : vector<1x128x128xbf16> to vector<128x128xbf16>
    %cst_14 = arith.constant dense<0.000000e+00> : vector<16x128xf32>
    %20 = tpu.matmul %10, %19, %cst_14 {dimension_numbers = #tpu.dot_dimension_numbers<[1], [0], [0], [1], [0, 0, 1, 1], [], []>} : vector<16x128xbf16>, vector<128x128xbf16>, vector<16x128xf32> -> vector<16x128xf32>
    %21 = arith.addf %17, %20 : vector<16x128xf32>
    %c0_15 = arith.constant 0 : index
    %c0_16 = arith.constant 0 : index
    %22 = vector.load %arg3[%c0_15, %c0_16] : memref<1x128xf32, #tpu.memory_space<vmem>>, vector<1x128xf32>
    %23 = vector.broadcast %22 : vector<1x128xf32> to vector<16x128xf32>
    %24 = arith.addf %21, %23 : vector<16x128xf32>
    %cst_17 = arith.constant 0.000000e+00 : f32
    %25 = vector.broadcast %cst_17 : f32 to vector<16x128xf32>
    %26 = arith.maximumf %24, %25 : vector<16x128xf32>
    %27 = arith.truncf %26 : vector<16x128xf32> to vector<16x128xbf16>
    %cst_18 = arith.constant dense<0.000000e+00> : vector<16x128xf32>
    %28 = tpu.matmul %0, %27, %cst_18 {dimension_numbers = #tpu.dot_dimension_numbers<[1], [0], [0], [1], [0, 0, 1, 1], [], []>} : vector<16x16xbf16>, vector<16x128xbf16>, vector<16x128xf32> -> vector<16x128xf32>
    %29 = arith.truncf %28 : vector<16x128xf32> to vector<16x128xbf16>
    %cst_19 = arith.constant dense<0.000000e+00> : vector<16x128xf32>
    %30 = tpu.matmul %0, %29, %cst_19 {dimension_numbers = #tpu.dot_dimension_numbers<[1], [0], [0], [1], [0, 0, 1, 1], [], []>} : vector<16x16xbf16>, vector<16x128xbf16>, vector<16x128xf32> -> vector<16x128xf32>
    %cst_20 = arith.constant 2.000000e+00 : f32
    %31 = vector.broadcast %cst_20 : f32 to vector<16x128xf32>
    %32 = arith.mulf %31, %30 : vector<16x128xf32>
    %33 = arith.subf %32, %26 : vector<16x128xf32>
    %34 = arith.truncf %33 : vector<16x128xf32> to vector<16x128xbf16>
    %c0_21 = arith.constant 0 : index
    %c0_22 = arith.constant 0 : index
    %c0_23 = arith.constant 0 : index
    %35 = vector.load %arg4[%c0_21, %c0_22, %c0_23] : memref<3x128x128xbf16, #tpu.memory_space<vmem>>, vector<1x128x128xbf16>
    %36 = vector.shape_cast %35 : vector<1x128x128xbf16> to vector<128x128xbf16>
    %cst_24 = arith.constant dense<0.000000e+00> : vector<16x128xf32>
    %37 = tpu.matmul %27, %36, %cst_24 {dimension_numbers = #tpu.dot_dimension_numbers<[1], [0], [0], [1], [0, 0, 1, 1], [], []>} : vector<16x128xbf16>, vector<128x128xbf16>, vector<16x128xf32> -> vector<16x128xf32>
    %c1_25 = arith.constant 1 : index
    %c0_26 = arith.constant 0 : index
    %c0_27 = arith.constant 0 : index
    %38 = vector.load %arg4[%c1_25, %c0_26, %c0_27] : memref<3x128x128xbf16, #tpu.memory_space<vmem>>, vector<1x128x128xbf16>
    %39 = vector.shape_cast %38 : vector<1x128x128xbf16> to vector<128x128xbf16>
    %cst_28 = arith.constant dense<0.000000e+00> : vector<16x128xf32>
    %40 = tpu.matmul %29, %39, %cst_28 {dimension_numbers = #tpu.dot_dimension_numbers<[1], [0], [0], [1], [0, 0, 1, 1], [], []>} : vector<16x128xbf16>, vector<128x128xbf16>, vector<16x128xf32> -> vector<16x128xf32>
    %41 = arith.addf %37, %40 : vector<16x128xf32>
    %c2_29 = arith.constant 2 : index
    %c0_30 = arith.constant 0 : index
    %c0_31 = arith.constant 0 : index
    %42 = vector.load %arg4[%c2_29, %c0_30, %c0_31] : memref<3x128x128xbf16, #tpu.memory_space<vmem>>, vector<1x128x128xbf16>
    %43 = vector.shape_cast %42 : vector<1x128x128xbf16> to vector<128x128xbf16>
    %cst_32 = arith.constant dense<0.000000e+00> : vector<16x128xf32>
    %44 = tpu.matmul %34, %43, %cst_32 {dimension_numbers = #tpu.dot_dimension_numbers<[1], [0], [0], [1], [0, 0, 1, 1], [], []>} : vector<16x128xbf16>, vector<128x128xbf16>, vector<16x128xf32> -> vector<16x128xf32>
    %45 = arith.addf %41, %44 : vector<16x128xf32>
    %c0_33 = arith.constant 0 : index
    %c0_34 = arith.constant 0 : index
    %46 = vector.load %arg5[%c0_33, %c0_34] : memref<1x128xf32, #tpu.memory_space<vmem>>, vector<1x128xf32>
    %47 = vector.broadcast %46 : vector<1x128xf32> to vector<16x128xf32>
    %48 = arith.addf %45, %47 : vector<16x128xf32>
    %cst_35 = arith.constant 0.000000e+00 : f32
    %49 = vector.broadcast %cst_35 : f32 to vector<16x128xf32>
    %50 = arith.maximumf %48, %49 : vector<16x128xf32>
    %51 = arith.truncf %50 : vector<16x128xf32> to vector<16x128xbf16>
    %cst_36 = arith.constant dense<0.000000e+00> : vector<16x128xf32>
    %52 = tpu.matmul %0, %51, %cst_36 {dimension_numbers = #tpu.dot_dimension_numbers<[1], [0], [0], [1], [0, 0, 1, 1], [], []>} : vector<16x16xbf16>, vector<16x128xbf16>, vector<16x128xf32> -> vector<16x128xf32>
    %53 = arith.truncf %52 : vector<16x128xf32> to vector<16x128xbf16>
    %cst_37 = arith.constant dense<0.000000e+00> : vector<16x128xf32>
    %54 = tpu.matmul %0, %53, %cst_37 {dimension_numbers = #tpu.dot_dimension_numbers<[1], [0], [0], [1], [0, 0, 1, 1], [], []>} : vector<16x16xbf16>, vector<16x128xbf16>, vector<16x128xf32> -> vector<16x128xf32>
    %cst_38 = arith.constant 2.000000e+00 : f32
    %55 = vector.broadcast %cst_38 : f32 to vector<16x128xf32>
    %56 = arith.mulf %55, %54 : vector<16x128xf32>
    %57 = arith.subf %56, %50 : vector<16x128xf32>
    %58 = arith.truncf %57 : vector<16x128xf32> to vector<16x128xbf16>
    %c0_39 = arith.constant 0 : index
    %c0_40 = arith.constant 0 : index
    %c0_41 = arith.constant 0 : index
    %59 = vector.load %arg6[%c0_39, %c0_40, %c0_41] : memref<3x128x128xbf16, #tpu.memory_space<vmem>>, vector<1x128x128xbf16>
    %60 = vector.shape_cast %59 : vector<1x128x128xbf16> to vector<128x128xbf16>
    %cst_42 = arith.constant dense<0.000000e+00> : vector<16x128xf32>
    %61 = tpu.matmul %51, %60, %cst_42 {dimension_numbers = #tpu.dot_dimension_numbers<[1], [0], [0], [1], [0, 0, 1, 1], [], []>} : vector<16x128xbf16>, vector<128x128xbf16>, vector<16x128xf32> -> vector<16x128xf32>
    %c1_43 = arith.constant 1 : index
    %c0_44 = arith.constant 0 : index
    %c0_45 = arith.constant 0 : index
    %62 = vector.load %arg6[%c1_43, %c0_44, %c0_45] : memref<3x128x128xbf16, #tpu.memory_space<vmem>>, vector<1x128x128xbf16>
    %63 = vector.shape_cast %62 : vector<1x128x128xbf16> to vector<128x128xbf16>
    %cst_46 = arith.constant dense<0.000000e+00> : vector<16x128xf32>
    %64 = tpu.matmul %53, %63, %cst_46 {dimension_numbers = #tpu.dot_dimension_numbers<[1], [0], [0], [1], [0, 0, 1, 1], [], []>} : vector<16x128xbf16>, vector<128x128xbf16>, vector<16x128xf32> -> vector<16x128xf32>
    %65 = arith.addf %61, %64 : vector<16x128xf32>
    %c2_47 = arith.constant 2 : index
    %c0_48 = arith.constant 0 : index
    %c0_49 = arith.constant 0 : index
    %66 = vector.load %arg6[%c2_47, %c0_48, %c0_49] : memref<3x128x128xbf16, #tpu.memory_space<vmem>>, vector<1x128x128xbf16>
    %67 = vector.shape_cast %66 : vector<1x128x128xbf16> to vector<128x128xbf16>
    %cst_50 = arith.constant dense<0.000000e+00> : vector<16x128xf32>
    %68 = tpu.matmul %58, %67, %cst_50 {dimension_numbers = #tpu.dot_dimension_numbers<[1], [0], [0], [1], [0, 0, 1, 1], [], []>} : vector<16x128xbf16>, vector<128x128xbf16>, vector<16x128xf32> -> vector<16x128xf32>
    %69 = arith.addf %65, %68 : vector<16x128xf32>
    %c0_51 = arith.constant 0 : index
    %c0_52 = arith.constant 0 : index
    %70 = vector.load %arg7[%c0_51, %c0_52] : memref<1x128xf32, #tpu.memory_space<vmem>>, vector<1x128xf32>
    %71 = vector.broadcast %70 : vector<1x128xf32> to vector<16x128xf32>
    %72 = arith.addf %69, %71 : vector<16x128xf32>
    %c0_53 = arith.constant 0 : index
    %c0_54 = arith.constant 0 : index
    %73 = vector.load %arg8[%c0_53, %c0_54] : memref<16x128xf32, #tpu.memory_space<vmem>>, vector<16x128xf32>
    tpu.vector_store %arg8[%c0_53, %c0_54], %72 {strides = array<i32>} : memref<16x128xf32, #tpu.memory_space<vmem>>, vector<16x128xf32>,
    return
  }
}

</mosaic_0001>

<bundles_post_ra>
// kernel: dgcnn_encoder.1
= control target key start
LH: loop header
LB: loop body
LE: loop exit
PB: predicated region body
PF: predicated region fallthrough
CT: control target
= control target key end

     0   :  { %v1914_v1 = vmov 0.0   ;;  %vm1915_vm0 = vmmov 0   ;;  %vm48_vm1 = vcmask 130048   ;;  %s2360_s0 = inlined_call_operand.vmem [shape: bf16[16,16], index: 0, kind: input, shape index: {}]   ;;  %s2361_s1 = inlined_call_operand.vmem [shape: bf16[16,128], index: 1, kind: input, shape index: {}]   ;;  %s2362_s2 = inlined_call_operand.vmem [shape: bf16[3,128,128], index: 2, kind: input, shape index: {}]   ;;  %s2363_s3 = inlined_call_operand.vmem [shape: f32[1,128], index: 3, kind: input, shape index: {}]   ;;  %s2364_s4 = inlined_call_operand.vmem [shape: bf16[3,128,128], index: 4, kind: input, shape index: {}]   ;;  %s2365_s5 = inlined_call_operand.vmem [shape: f32[1,128], index: 5, kind: input, shape index: {}]   ;;  %s2366_s6 = inlined_call_operand.vmem [shape: bf16[3,128,128], index: 6, kind: input, shape index: {}]   ;;  %s2367_s7 = inlined_call_operand.vmem [shape: f32[1,128], index: 7, kind: input, shape index: {}]   ;;  %s2368_s8 = inlined_call_operand.hbm [shape: f32[16,128], index: 8, kind: output, shape index: {}]  }
   0x1   :  { %v1967_v0 = vld [vmem:[%s2361_s1] sm:$0xff]   ;;  %1596 = vmatprep.subr.bf16.mxu0 %v1914_v1  ;;  %1598 = vmatprep.mubr.msk.bf16.mxu0 %vm1915_vm0, %v1914_v1  ;;  %v1819_v3 = vld [vmem:[%s2362_s2 + $0x78] sm:$0xff]   ;;  %v1820_v4 = vld [vmem:[%s2362_s2 + $0x70] sm:$0xff]  }
   0x2   :  { %v1975_v2 = vld [vmem:[%s2360_s0] sm:$0xff]   ;;  %1602 = vmatprep.subr.bf16.mxu1 %v1914_v1  ;;  %1604 = vmatprep.mubr.msk.bf16.mxu1 %vm1915_vm0, %v1914_v1  ;;  %v1821_v5 = vld [vmem:[%s2362_s2 + $0x68] sm:$0xff]   ;;  %v1823_v7 = vld [vmem:[%s2362_s2 + $0x58] sm:$0xff]  }
   0x3   :  { %1597 = vmatpush3.bf16.msra.mxu0 %v1967_v0  ;;  %v1822_v6 = vld [vmem:[%s2362_s2 + $0x60] sm:$0xff]   ;;  %v1824_v8 = vld [vmem:[%s2362_s2 + $0x50] sm:$0xff]  }
   0x4   :  { %1608 = vmatprep.subr.bf16.mxu0 %v1914_v1 }
   0x6   :  { %1599 = vmatmul.mubr.msk.bf16.vlgmr.msra.gmra.mxu0 %vm48_vm1, %v1975_v2 }
   0x7   :  { %1609 = vmatpush3.bf16.msra.mxu0 %v1819_v3  ;;  %1624 = vmatprep.mubr.msk.bf16.mxu0 %vm1915_vm0, %v1914_v1 }
   0x8   :  { %1610 = vmatprep.subr.bf16.mxu0 %v1914_v1 }
   0xb   :  { %1611 = vmatpush3.bf16.msra.mxu0 %v1820_v4 }
   0xc   :  { %1612 = vmatprep.subr.bf16.mxu0 %v1914_v1 }
   0xf   :  { %1613 = vmatpush3.bf16.msra.mxu0 %v1821_v5 }
  0x10   :  { %1614 = vmatprep.subr.bf16.mxu0 %v1914_v1 }
  0x13   :  { %1615 = vmatpush3.bf16.msra.mxu0 %v1822_v6 }
  0x14   :  { %1616 = vmatprep.subr.bf16.mxu0 %v1914_v1 }
  0x17   :  { %1617 = vmatpush3.bf16.msra.mxu0 %v1823_v7 }
  0x18   :  { %1618 = vmatprep.subr.bf16.mxu0 %v1914_v1 }
  0x1b   :  { %1619 = vmatpush3.bf16.msra.mxu0 %v1824_v8 }
  0x1c   :  { %1620 = vmatprep.subr.bf16.mxu0 %v1914_v1 }
  0x1d   :  { %13 = vsyncpa [#allocation3], 0  ;;  %v1825_v9 = vld [vmem:[%s2362_s2 + $0x48] sm:$0xff]   ;;  %v1826_v10 = vld [vmem:[%s2362_s2 + $0x40] sm:$0xff]   ;;  %v35_v37 = vunpack.c.l.bf16 %v1967_v0  ;;  %v36_v38 = vunpack.c.h.bf16 %v1967_v0  ;;  %s1916_s24 = smov [#allocation2]  }
  0x1e   :  { %v1835_v14 = vld [vmem:[%s2362_s2 + $0xb8] sm:$0xff]   ;;  %v1836_v18 = vld [vmem:[%s2362_s2 + $0xb0] sm:$0xff]   ;;  %v1837_v20 = vld [vmem:[%s2362_s2 + $0xa8] sm:$0xff]   ;;  %s1313_s25 = sshll.u32 %s1916_s24, 4  ;;  %s1314_s25 = int_to_ptr.vmem [resolvable:$true] %s1313_s25 }
  0x1f   :  { %1621 = vmatpush3.bf16.msra.mxu0 %v1825_v9  ;;  %v1827_v17 = vld [vmem:[%s2362_s2 + $0x38] sm:$0xff]   ;;  %v1828_v19 = vld [vmem:[%s2362_s2 + $0x30] sm:$0xff]   ;;  %v1829_v21 = vld [vmem:[%s2362_s2 + $0x28] sm:$0xff]   ;;  %s1892_s26 = scalar_lea.vmem %s1314_s25, 256  ;;  %p1897_p1 = scmp.lt.s32.totalorder %s1314_s25, %s1314_s25 }
  0x20   :  { %1622 = vmatprep.subr.bf16.mxu0 %v1914_v1  ;;  %v1838_v22 = vld [vmem:[%s2362_s2 + $0xa0] sm:$0xff]   ;;  %v1839_v24 = vld [vmem:[%s2362_s2 + $0x98] sm:$0xff]   ;;  %v1832_v26 = vld [vmem:[%s2362_s2 + $0x10] sm:$0xff]   ;;  %p1893_p0 = scmp.ne.s32.totalorder %s1314_s25, %s1892_s26  ;;  %p1898_p2 = scmp.lt.s32.totalorder %s1892_s26, %s1892_s26 }
  0x21   :  { %v1830_v23 = vld [vmem:[%s2362_s2 + $0x20] sm:$0xff]   ;;  %v1831_v25 = vld [vmem:[%s2362_s2 + $0x18] sm:$0xff]   ;;  %v1833_v27 = vld [vmem:[%s2362_s2 + $0x8] sm:$0xff]  }
  0x22   :  { %v1834_v28 = vld [vmem:[%s2362_s2] sm:$0xff]   ;;  %v1840_v29 = vld [vmem:[%s2362_s2 + $0x90] sm:$0xff]   ;;  %v1841_v30 = vld [vmem:[%s2362_s2 + $0x88] sm:$0xff]   ;;  %p1899_p3 = por %p1898_p2, %p1897_p1 }
  0x23   :  { %1623 = vmatpush3.bf16.msra.mxu0 %v1826_v10  ;;  %v1842_v31 = vld [vmem:[%s2362_s2 + $0x80] sm:$0xff]   ;;  %v1843_v46 = vld [vmem:[%s2364_s4 + $0x38] sm:$0xff]   ;;  %v1844_v48 = vld [vmem:[%s2364_s4 + $0x30] sm:$0xff]  }
  0x24   :  { %1648 = vmatprep.subr.bf16.mxu0 %v1914_v1  ;;  %v1845_v49 = vld [vmem:[%s2364_s4 + $0x28] sm:$0xff]   ;;  %v1846_v50 = vld [vmem:[%s2364_s4 + $0x20] sm:$0xff]   ;;  %v1847_v51 = vld [vmem:[%s2364_s4 + $0x18] sm:$0xff]   ;;  %p1900_p4 = pnand %p1899_p3, %p1893_p0 }
  0x25   :  { %v1848_v58 = vld [vmem:[%s2364_s4 + $0x10] sm:$0xff]   ;;  %v1849_v59 = vld [vmem:[%s2364_s4 + $0x8] sm:$0xff]   ;;  %v1850_v60 = vld [vmem:[%s2364_s4] sm:$0xff]  }
  0x26   :  { %v1384_v63 = vld [vmem:[%s2363_s3] ss:$0 sm:$0xff] }
  0xc6   :  { %v86_v11 = vpop.f32.mrf.mxu0 }
  0xc8   :  { %v1600_v12 = vpop.f32.mrf.mxu0 }
  0xca   :  { %v89_v13 = vpop.f32.mrf.mxu0 }
  0xcb   :  { %v93_v15 = vpack.c.bf16 %v89_v13, %v86_v11 }
  0xcc   :  { %v1601_v16 = vpop.f32.mrf.mxu0 }
  0xcd   :  { %1603 = vmatpush3.bf16.msra.mxu1 %v93_v15  ;;  %1625 = vmatmul.mubr.bf16.vlgmr.msra.gmra.mxu0 %v93_v15 }
  0xce   :  { %1628 = vmatprep.subr.bf16.mxu1 %v1914_v1  ;;  %1649 = vmatpush3.bf16.msra.mxu0 %v1835_v14 }
  0xcf   :  { %1650 = vmatprep.subr.bf16.mxu0 %v1914_v1  ;;  %1664 = vmatprep.mubr.msk.bf16.mxu0 %vm1915_vm0, %v1914_v1 }
  0xd0   :  { %1605 = vmatmul.mubr.msk.bf16.vlgmr.msra.gmra.mxu1 %vm48_vm1, %v1975_v2 }
  0xd1   :  { %1629 = vmatpush3.bf16.msra.mxu1 %v1827_v17  ;;  %1644 = vmatprep.mubr.msk.bf16.mxu1 %vm1915_vm0, %v1914_v1 }
  0xd2   :  { %1630 = vmatprep.subr.bf16.mxu1 %v1914_v1  ;;  %1651 = vmatpush3.bf16.msra.mxu0 %v1836_v18 }
  0xd3   :  { %1652 = vmatprep.subr.bf16.mxu0 %v1914_v1 }
  0xd5   :  { %1631 = vmatpush3.bf16.msra.mxu1 %v1828_v19 }
  0xd6   :  { %1632 = vmatprep.subr.bf16.mxu1 %v1914_v1  ;;  %1653 = vmatpush3.bf16.msra.mxu0 %v1837_v20  ;;  %v1851_v20 = vld [vmem:[%s2364_s4 + $0x78] sm:$0xff]  }
  0xd7   :  { %1654 = vmatprep.subr.bf16.mxu0 %v1914_v1 }
  0xd9   :  { %1633 = vmatpush3.bf16.msra.mxu1 %v1829_v21  ;;  %v1852_v21 = vld [vmem:[%s2364_s4 + $0x70] sm:$0xff]  }
  0xda   :  { %1634 = vmatprep.subr.bf16.mxu1 %v1914_v1  ;;  %1655 = vmatpush3.bf16.msra.mxu0 %v1838_v22  ;;  %v1853_v22 = vld [vmem:[%s2364_s4 + $0x68] sm:$0xff]  }
  0xdb   :  { %1656 = vmatprep.subr.bf16.mxu0 %v1914_v1 }
  0xdd   :  { %1635 = vmatpush3.bf16.msra.mxu1 %v1830_v23  ;;  %v1854_v23 = vld [vmem:[%s2364_s4 + $0x60] sm:$0xff]  }
  0xde   :  { %1636 = vmatprep.subr.bf16.mxu1 %v1914_v1  ;;  %1657 = vmatpush3.bf16.msra.mxu0 %v1839_v24  ;;  %v1855_v24 = vld [vmem:[%s2364_s4 + $0x58] sm:$0xff]  }
  0xdf   :  { %1658 = vmatprep.subr.bf16.mxu0 %v1914_v1 }
  0xe1   :  { %1637 = vmatpush3.bf16.msra.mxu1 %v1831_v25  ;;  %v1856_v25 = vld [vmem:[%s2364_s4 + $0x50] sm:$0xff]  }
  0xe2   :  { %1638 = vmatprep.subr.bf16.mxu1 %v1914_v1  ;;  %1659 = vmatpush3.bf16.msra.mxu0 %v1840_v29  ;;  %v1860_v29 = vld [vmem:[%s2364_s4 + $0xb0] sm:$0xff]  }
  0xe3   :  { %1660 = vmatprep.subr.bf16.mxu0 %v1914_v1 }
  0xe5   :  { %1639 = vmatpush3.bf16.msra.mxu1 %v1832_v26  ;;  %v1857_v26 = vld [vmem:[%s2364_s4 + $0x48] sm:$0xff]  }
  0xe6   :  { %1640 = vmatprep.subr.bf16.mxu1 %v1914_v1  ;;  %1661 = vmatpush3.bf16.msra.mxu0 %v1841_v30  ;;  %v1861_v30 = vld [vmem:[%s2364_s4 + $0xa8] sm:$0xff]  }
  0xe7   :  { %1662 = vmatprep.subr.bf16.mxu0 %v1914_v1 }
  0xe9   :  { %1641 = vmatpush3.bf16.msra.mxu1 %v1833_v27  ;;  %v1858_v27 = vld [vmem:[%s2364_s4 + $0x40] sm:$0xff]  }
  0xea   :  { %1642 = vmatprep.subr.bf16.mxu1 %v1914_v1  ;;  %1663 = vmatpush3.bf16.msra.mxu0 %v1842_v31  ;;  %v1862_v31 = vld [vmem:[%s2364_s4 + $0xa0] sm:$0xff]  }
  0xeb   :  { %1700 = vmatprep.subr.bf16.mxu0 %v1914_v1 }
  0xed   :  { %1643 = vmatpush3.bf16.msra.mxu1 %v1834_v28  ;;  %v1859_v28 = vld [vmem:[%s2364_s4 + $0xb8] sm:$0xff]  }
  0xee   :  { %1668 = vmatprep.subr.bf16.mxu1 %v1914_v1 }
  0xf0   :  { %1645 = vmatmul.mubr.bf16.vlgmr.msra.gmra.mxu1 %v1967_v0 }
  0xf1   :  { %1670 = vmatprep.mubr.msk.bf16.mxu1 %vm1915_vm0, %v1914_v1 }
 0x18d   :  { %v255_v32 = vpop.f32.mrf.mxu0 }
 0x18f   :  { %v1626_v33 = vpop.f32.mrf.mxu0 }
 0x190   :  { %v128_v34 = vpop.f32.mrf.mxu1  ;;  %v1864_v33 = vld [vmem:[%s2364_s4 + $0x90] sm:$0xff]  }
 0x191   :  { %v258_v35 = vpop.f32.mrf.mxu0  ;;  %v135_v39 = vmul.f32 2.0, %v128_v34  ;;  %v1865_v34 = vld [vmem:[%s2364_s4 + $0x88] sm:$0xff]  }
 0x192   :  { %v1606_v36 = vpop.f32.mrf.mxu1 }
 0x193   :  { %v1627_v40 = vpop.f32.mrf.mxu0  ;;  %v137_v44 = vsub.f32 %v135_v39, %v35_v37 }
 0x194   :  { %v131_v41 = vpop.f32.mrf.mxu1 }
 0x195   :  { %v136_v42 = vmul.f32 2.0, %v131_v41 }
 0x196   :  { %v1607_v43 = vpop.f32.mrf.mxu1 }
 0x197   :  { %v138_v45 = vsub.f32 %v136_v42, %v36_v38 }
 0x199   :  { %v139_v47 = vpack.c.bf16 %v138_v45, %v137_v44 }
 0x19b   :  { %1665 = vmatmul.mubr.bf16.vlgmr.msra.gmra.mxu0 %v139_v47 }
 0x19c   :  { %1701 = vmatpush3.bf16.msra.mxu0 %v1843_v46  ;;  %1716 = vmatprep.mubr.msk.bf16.mxu0 %vm1915_vm0, %v1914_v1 }
 0x19d   :  { %1702 = vmatprep.subr.bf16.mxu0 %v1914_v1 }
 0x1a0   :  { %1703 = vmatpush3.bf16.msra.mxu0 %v1844_v48 }
 0x1a1   :  { %1704 = vmatprep.subr.bf16.mxu0 %v1914_v1 }
 0x1a4   :  { %1705 = vmatpush3.bf16.msra.mxu0 %v1845_v49  ;;  %v1867_v49 = vld [vmem:[%s2366_s6 + $0x78] sm:$0xff]  }
 0x1a5   :  { %1706 = vmatprep.subr.bf16.mxu0 %v1914_v1 }
 0x1a8   :  { %1707 = vmatpush3.bf16.msra.mxu0 %v1846_v50  ;;  %v1868_v50 = vld [vmem:[%s2366_s6 + $0x70] sm:$0xff]  }
 0x1a9   :  { %1708 = vmatprep.subr.bf16.mxu0 %v1914_v1 }
 0x1ac   :  { %1709 = vmatpush3.bf16.msra.mxu0 %v1847_v51  ;;  %v1869_v51 = vld [vmem:[%s2366_s6 + $0x68] sm:$0xff]  }
 0x1ad   :  { %1710 = vmatprep.subr.bf16.mxu0 %v1914_v1 }
 0x1b0   :  { %v344_v52 = vpop.f32.mrf.mxu1  ;;  %1711 = vmatpush3.bf16.msra.mxu0 %v1848_v58  ;;  %v1443_v58 = vld [vmem:[%s2365_s5] ss:$0 sm:$0xff] }
 0x1b1   :  { %v345_v53 = vadd.f32 %v344_v52, %v255_v32  ;;  %1712 = vmatprep.subr.bf16.mxu0 %v1914_v1  ;;  %v1863_v32 = vld [vmem:[%s2364_s4 + $0x98] sm:$0xff]   ;;  %v1870_v52 = vld [vmem:[%s2366_s6 + $0x60] sm:$0xff]  }
 0x1b2   :  { %v1646_v54 = vpop.f32.mrf.mxu1 }
 0x1b3   :  { %v1872_v54 = vld [vmem:[%s2366_s6 + $0x50] sm:$0xff]  }
 0x1b4   :  { %v347_v55 = vpop.f32.mrf.mxu1  ;;  %1713 = vmatpush3.bf16.msra.mxu0 %v1849_v59 }
 0x1b5   :  { %v348_v56 = vadd.f32 %v347_v55, %v258_v35  ;;  %1714 = vmatprep.subr.bf16.mxu0 %v1914_v1  ;;  %v1866_v35 = vld [vmem:[%s2364_s4 + $0x80] sm:$0xff]  }
 0x1b6   :  { %v1647_v57 = vpop.f32.mrf.mxu1 }
 0x1b8   :  { %1715 = vmatpush3.bf16.msra.mxu0 %v1850_v60 }
 0x1b9   :  { %1752 = vmatprep.subr.bf16.mxu0 %v1914_v1 }
 0x25b   :  { %v450_v61 = vpop.f32.mrf.mxu0 }
 0x25c   :  { %v457_v62 = vadd.f32 %v450_v61, %v345_v53  ;;  %v1871_v53 = vld [vmem:[%s2366_s6 + $0x58] sm:$0xff]  }
 0x25d   :  { %v1666_v0 = vpop.f32.mrf.mxu0 }
 0x25e   :  { %v2131_v4 = vadd.f32 %v1384_v63, %v457_v62 }
 0x25f   :  { %v453_v3 = vpop.f32.mrf.mxu0 }
 0x260   :  { %v458_v5 = vadd.f32 %v453_v3, %v348_v56  ;;  %v468_v8 = vmax.f32 %v2131_v4, 0.0 }
 0x261   :  { %v1667_v6 = vpop.f32.mrf.mxu0 }
 0x262   :  { %v2133_v7 = vadd.f32 %v1384_v63, %v458_v5 }
 0x264   :  { %v469_v9 = vmax.f32 %v2133_v7, 0.0  ;;  %v1873_v7 = vld [vmem:[%s2366_s6 + $0x48] sm:$0xff]  }
 0x266   :  { %v470_v10 = vpack.c.bf16 %v469_v9, %v468_v8 }
 0x268   :  { %1669 = vmatpush3.bf16.msra.mxu1 %v470_v10  ;;  %1717 = vmatmul.mubr.bf16.vlgmr.msra.gmra.mxu0 %v470_v10 }
 0x269   :  { %1674 = vmatprep.subr.bf16.mxu1 %v1914_v1  ;;  %1768 = vmatprep.mubr.msk.bf16.mxu0 %vm1915_vm0, %v1914_v1 }
 0x26a   :  { %1753 = vmatpush3.bf16.msra.mxu0 %v1867_v49 }
 0x26b   :  { %1671 = vmatmul.mubr.msk.bf16.vlgmr.msra.gmra.mxu1 %vm48_vm1, %v1975_v2  ;;  %1754 = vmatprep.subr.bf16.mxu0 %v1914_v1 }
 0x26c   :  { %1676 = vmatprep.mubr.msk.bf16.mxu1 %vm1915_vm0, %v1914_v1 }
 0x26e   :  { %1755 = vmatpush3.bf16.msra.mxu0 %v1868_v50 }
 0x26f   :  { %1756 = vmatprep.subr.bf16.mxu0 %v1914_v1 }
 0x272   :  { %1757 = vmatpush3.bf16.msra.mxu0 %v1869_v51 }
 0x273   :  { %1758 = vmatprep.subr.bf16.mxu0 %v1914_v1 }
 0x276   :  { %1759 = vmatpush3.bf16.msra.mxu0 %v1870_v52 }
 0x277   :  { %1760 = vmatprep.subr.bf16.mxu0 %v1914_v1 }
 0x27a   :  { %1761 = vmatpush3.bf16.msra.mxu0 %v1871_v53 }
 0x27b   :  { %1762 = vmatprep.subr.bf16.mxu0 %v1914_v1 }
 0x27e   :  { %1763 = vmatpush3.bf16.msra.mxu0 %v1872_v54 }
 0x27f   :  { %1764 = vmatprep.subr.bf16.mxu0 %v1914_v1 }
 0x282   :  { %1765 = vmatpush3.bf16.msra.mxu0 %v1873_v7 }
 0x283   :  { %1766 = vmatprep.subr.bf16.mxu0 %v1914_v1 }
 0x328   :  { %v2148_v11 = vpop.f32.mrf.mxu0 }
 0x32a   :  { %v1718_v12 = vpop.f32.mrf.mxu0 }
 0x32b   :  { %v505_v13 = vpop.f32.mrf.mxu1  ;;  %v1883_v12 = vld [vmem:[%s2366_s6 + $0xb8] sm:$0xff]  }
 0x32c   :  { %v2150_v14 = vpop.f32.mrf.mxu0 }
 0x32d   :  { %v1672_v15 = vpop.f32.mrf.mxu1 }
 0x32e   :  { %v1719_v16 = vpop.f32.mrf.mxu0  ;;  %v1875_v15 = vld [vmem:[%s2366_s6 + $0x38] sm:$0xff]  }
 0x32f   :  { %v508_v17 = vpop.f32.mrf.mxu1  ;;  %v1884_v16 = vld [vmem:[%s2366_s6 + $0xb0] sm:$0xff]  }
 0x330   :  { %v512_v18 = vpack.c.bf16 %v508_v17, %v505_v13  ;;  %v1876_v17 = vld [vmem:[%s2366_s6 + $0x30] sm:$0xff]  }
 0x331   :  { %v1673_v19 = vpop.f32.mrf.mxu1 }
 0x332   :  { %1675 = vmatpush3.bf16.msra.mxu1 %v512_v18  ;;  %v1886_v19 = vld [vmem:[%s2366_s6 + $0xa0] sm:$0xff]  }
 0x333   :  { %1680 = vmatprep.subr.bf16.mxu1 %v1914_v1 }
 0x335   :  { %1677 = vmatmul.mubr.msk.bf16.vlgmr.msra.gmra.mxu1 %vm48_vm1, %v1975_v2 }
 0x336   :  { %1681 = vmatpush3.bf16.msra.mxu1 %v1851_v20  ;;  %1696 = vmatprep.mubr.msk.bf16.mxu1 %vm1915_vm0, %v1914_v1  ;;  %v1878_v20 = vld [vmem:[%s2366_s6 + $0x20] sm:$0xff]  }
 0x337   :  { %1682 = vmatprep.subr.bf16.mxu1 %v1914_v1 }
 0x33a   :  { %1683 = vmatpush3.bf16.msra.mxu1 %v1852_v21  ;;  %v1887_v21 = vld [vmem:[%s2366_s6 + $0x98] sm:$0xff]  }
 0x33b   :  { %1684 = vmatprep.subr.bf16.mxu1 %v1914_v1 }
 0x33e   :  { %1685 = vmatpush3.bf16.msra.mxu1 %v1853_v22  ;;  %v1879_v22 = vld [vmem:[%s2366_s6 + $0x18] sm:$0xff]  }
 0x33f   :  { %1686 = vmatprep.subr.bf16.mxu1 %v1914_v1 }
 0x342   :  { %1687 = vmatpush3.bf16.msra.mxu1 %v1854_v23  ;;  %v1880_v23 = vld [vmem:[%s2366_s6 + $0x10] sm:$0xff]  }
 0x343   :  { %1688 = vmatprep.subr.bf16.mxu1 %v1914_v1 }
 0x346   :  { %1689 = vmatpush3.bf16.msra.mxu1 %v1855_v24  ;;  %v1881_v24 = vld [vmem:[%s2366_s6 + $0x8] sm:$0xff]  }
 0x347   :  { %1690 = vmatprep.subr.bf16.mxu1 %v1914_v1 }
 0x34a   :  { %1691 = vmatpush3.bf16.msra.mxu1 %v1856_v25  ;;  %v1882_v25 = vld [vmem:[%s2366_s6] sm:$0xff]  }
 0x34b   :  { %1692 = vmatprep.subr.bf16.mxu1 %v1914_v1 }
 0x34e   :  { %1693 = vmatpush3.bf16.msra.mxu1 %v1857_v26  ;;  %v1888_v26 = vld [vmem:[%s2366_s6 + $0x90] sm:$0xff]  }
 0x34f   :  { %1694 = vmatprep.subr.bf16.mxu1 %v1914_v1 }
 0x352   :  { %1695 = vmatpush3.bf16.msra.mxu1 %v1858_v27  ;;  %v1889_v27 = vld [vmem:[%s2366_s6 + $0x88] sm:$0xff]  }
 0x353   :  { %1720 = vmatprep.subr.bf16.mxu1 %v1914_v1 }
 0x355   :  { %1697 = vmatmul.mubr.bf16.vlgmr.msra.gmra.mxu1 %v512_v18  ;;  %v1885_v18 = vld [vmem:[%s2366_s6 + $0xa8] sm:$0xff]  }
 0x356   :  { %1721 = vmatpush3.bf16.msra.mxu1 %v1859_v28  ;;  %1736 = vmatprep.mubr.msk.bf16.mxu1 %vm1915_vm0, %v1914_v1  ;;  %v1890_v28 = vld [vmem:[%s2366_s6 + $0x80] sm:$0xff]  }
 0x357   :  { %1722 = vmatprep.subr.bf16.mxu1 %v1914_v1 }
 0x35a   :  { %1723 = vmatpush3.bf16.msra.mxu1 %v1860_v29 }
 0x35b   :  { %1724 = vmatprep.subr.bf16.mxu1 %v1914_v1 }
 0x35e   :  { %1725 = vmatpush3.bf16.msra.mxu1 %v1861_v30 }
 0x35f   :  { %1726 = vmatprep.subr.bf16.mxu1 %v1914_v1 }
 0x362   :  { %1727 = vmatpush3.bf16.msra.mxu1 %v1862_v31 }
 0x363   :  { %1728 = vmatprep.subr.bf16.mxu1 %v1914_v1 }
 0x366   :  { %1729 = vmatpush3.bf16.msra.mxu1 %v1863_v32 }
 0x367   :  { %1730 = vmatprep.subr.bf16.mxu1 %v1914_v1 }
 0x36a   :  { %1731 = vmatpush3.bf16.msra.mxu1 %v1864_v33 }
 0x36b   :  { %1732 = vmatprep.subr.bf16.mxu1 %v1914_v1 }
 0x36e   :  { %1733 = vmatpush3.bf16.msra.mxu1 %v1865_v34 }
 0x36f   :  { %1734 = vmatprep.subr.bf16.mxu1 %v1914_v1 }
 0x372   :  { %1735 = vmatpush3.bf16.msra.mxu1 %v1866_v35 }
 0x373   :  { %1740 = vmatprep.subr.bf16.mxu1 %v1914_v1 }
 0x3f5   :  { %v547_v36 = vpop.f32.mrf.mxu1 }
 0x3f6   :  { %v554_v38 = vmul.f32 2.0, %v547_v36 }
 0x3f7   :  { %v1678_v37 = vpop.f32.mrf.mxu1 }
 0x3f8   :  { %v556_v42 = vsub.f32 %v554_v38, %v468_v8  ;;  %v1874_v8 = vld [vmem:[%s2366_s6 + $0x40] sm:$0xff]  }
 0x3f9   :  { %v550_v39 = vpop.f32.mrf.mxu1  ;;  %1767 = vmatpush3.bf16.msra.mxu0 %v1874_v8 }
 0x3fa   :  { %v555_v40 = vmul.f32 2.0, %v550_v39  ;;  %1792 = vmatprep.subr.bf16.mxu0 %v1914_v1 }
 0x3fb   :  { %v1679_v41 = vpop.f32.mrf.mxu1 }
 0x3fc   :  { %v557_v43 = vsub.f32 %v555_v40, %v469_v9 }
 0x3fe   :  { %v558_v44 = vpack.c.bf16 %v557_v43, %v556_v42 }
 0x400   :  { %1737 = vmatmul.mubr.bf16.vlgmr.msra.gmra.mxu1 %v558_v44 }
 0x401   :  { %1742 = vmatprep.mubr.msk.bf16.mxu1 %vm1915_vm0, %v1914_v1 }
 0x415   :  { %v674_v45 = vpop.f32.mrf.mxu1 }
 0x416   :  { %v764_v55 = vadd.f32 %v2148_v11, %v674_v45 }
 0x417   :  { %v1698_v46 = vpop.f32.mrf.mxu1 }
 0x419   :  { %v677_v47 = vpop.f32.mrf.mxu1 }
 0x41a   :  { %v767_v60 = vadd.f32 %v2150_v14, %v677_v47 }
 0x41b   :  { %v1699_v48 = vpop.f32.mrf.mxu1 }
 0x41c   :  { %v1502_v48 = vld [vmem:[%s2367_s7] ss:$0 sm:$0xff] }
 0x4c0   :  { %v869_v56 = vpop.f32.mrf.mxu1 }
 0x4c1   :  { %v876_v57 = vadd.f32 %v869_v56, %v764_v55 }
 0x4c2   :  { %v1738_v59 = vpop.f32.mrf.mxu1 }
 0x4c3   :  { %v2258_v62 = vadd.f32 %v1443_v58, %v876_v57 }
 0x4c4   :  { %v872_v61 = vpop.f32.mrf.mxu1 }
 0x4c5   :  { %v877_v63 = vadd.f32 %v872_v61, %v767_v60  ;;  %v887_v4 = vmax.f32 %v2258_v62, 0.0 }
 0x4c6   :  { %v1739_v0 = vpop.f32.mrf.mxu1 }
 0x4c7   :  { %v2260_v3 = vadd.f32 %v1443_v58, %v877_v63 }
 0x4c9   :  { %v888_v5 = vmax.f32 %v2260_v3, 0.0 }
 0x4cb   :  { %v889_v6 = vpack.c.bf16 %v888_v5, %v887_v4 }
 0x4cd   :  { %1741 = vmatpush3.bf16.msra.mxu1 %v889_v6 }
 0x4ce   :  { %1746 = vmatprep.subr.bf16.mxu1 %v1914_v1 }
 0x4d0   :  { %1743 = vmatmul.mubr.msk.bf16.vlgmr.msra.gmra.mxu1 %vm48_vm1, %v1975_v2 }
 0x4d1   :  { %1748 = vmatprep.mubr.msk.bf16.mxu1 %vm1915_vm0, %v1914_v1 }
 0x590   :  { %v924_v9 = vpop.f32.mrf.mxu1 }
 0x592   :  { %v1744_v10 = vpop.f32.mrf.mxu1 }
 0x594   :  { %v927_v11 = vpop.f32.mrf.mxu1 }
 0x595   :  { %v931_v13 = vpack.c.bf16 %v927_v11, %v924_v9 }
 0x596   :  { %v1745_v14 = vpop.f32.mrf.mxu1 }
 0x597   :  { %1747 = vmatpush3.bf16.msra.mxu1 %v931_v13  ;;  %1769 = vmatmul.mubr.bf16.vlgmr.msra.gmra.mxu0 %v931_v13 }
 0x598   :  { %1772 = vmatprep.subr.bf16.mxu1 %v1914_v1  ;;  %1793 = vmatpush3.bf16.msra.mxu0 %v1883_v12 }
 0x599   :  { %1794 = vmatprep.subr.bf16.mxu0 %v1914_v1  ;;  %1808 = vmatprep.mubr.msk.bf16.mxu0 %vm1915_vm0, %v1914_v1 }
 0x59a   :  { %1749 = vmatmul.mubr.msk.bf16.vlgmr.msra.gmra.mxu1 %vm48_vm1, %v1975_v2  ;;  %v1877_v2 = vld [vmem:[%s2366_s6 + $0x28] sm:$0xff]  }
 0x59b   :  { %1773 = vmatpush3.bf16.msra.mxu1 %v1875_v15  ;;  %1788 = vmatprep.mubr.msk.bf16.mxu1 %vm1915_vm0, %v1914_v1 }
 0x59c   :  { %1774 = vmatprep.subr.bf16.mxu1 %v1914_v1  ;;  %1795 = vmatpush3.bf16.msra.mxu0 %v1884_v16 }
 0x59d   :  { %1796 = vmatprep.subr.bf16.mxu0 %v1914_v1 }
 0x59f   :  { %1775 = vmatpush3.bf16.msra.mxu1 %v1876_v17 }
 0x5a0   :  { %1776 = vmatprep.subr.bf16.mxu1 %v1914_v1  ;;  %1797 = vmatpush3.bf16.msra.mxu0 %v1885_v18 }
 0x5a1   :  { %1798 = vmatprep.subr.bf16.mxu0 %v1914_v1 }
 0x5a3   :  { %1777 = vmatpush3.bf16.msra.mxu1 %v1877_v2 }
 0x5a4   :  { %1778 = vmatprep.subr.bf16.mxu1 %v1914_v1  ;;  %1799 = vmatpush3.bf16.msra.mxu0 %v1886_v19 }
 0x5a5   :  { %1800 = vmatprep.subr.bf16.mxu0 %v1914_v1 }
 0x5a7   :  { %1779 = vmatpush3.bf16.msra.mxu1 %v1878_v20 }
 0x5a8   :  { %1780 = vmatprep.subr.bf16.mxu1 %v1914_v1  ;;  %1801 = vmatpush3.bf16.msra.mxu0 %v1887_v21 }
 0x5a9   :  { %1802 = vmatprep.subr.bf16.mxu0 %v1914_v1 }
 0x5ab   :  { %1781 = vmatpush3.bf16.msra.mxu1 %v1879_v22 }
 0x5ac   :  { %1782 = vmatprep.subr.bf16.mxu1 %v1914_v1  ;;  %1803 = vmatpush3.bf16.msra.mxu0 %v1888_v26 }
 0x5ad   :  { %1804 = vmatprep.subr.bf16.mxu0 %v1914_v1 }
 0x5af   :  { %1783 = vmatpush3.bf16.msra.mxu1 %v1880_v23 }
 0x5b0   :  { %1784 = vmatprep.subr.bf16.mxu1 %v1914_v1  ;;  %1805 = vmatpush3.bf16.msra.mxu0 %v1889_v27 }
 0x5b1   :  { %1806 = vmatprep.subr.bf16.mxu0 %v1914_v1 }
 0x5b3   :  { %1785 = vmatpush3.bf16.msra.mxu1 %v1881_v24 }
 0x5b4   :  { %1786 = vmatprep.subr.bf16.mxu1 %v1914_v1  ;;  %1807 = vmatpush3.bf16.msra.mxu0 %v1890_v28 }
 0x5b7   :  { %1787 = vmatpush3.bf16.msra.mxu1 %v1882_v25 }
 0x5ba   :  { %1789 = vmatmul.mubr.bf16.vlgmr.msra.gmra.mxu1 %v889_v6 }
 0x657   :  { %v1093_v29 = vpop.f32.mrf.mxu0 }
 0x659   :  { %v1770_v30 = vpop.f32.mrf.mxu0 }
 0x65a   :  { %v966_v31 = vpop.f32.mrf.mxu1 }
 0x65b   :  { %v1096_v32 = vpop.f32.mrf.mxu0  ;;  %v973_v34 = vmul.f32 2.0, %v966_v31 }
 0x65c   :  { %v1750_v33 = vpop.f32.mrf.mxu1 }
 0x65d   :  { %v1771_v35 = vpop.f32.mrf.mxu0  ;;  %v975_v39 = vsub.f32 %v973_v34, %v887_v4 }
 0x65e   :  { %v969_v36 = vpop.f32.mrf.mxu1 }
 0x65f   :  { %v974_v37 = vmul.f32 2.0, %v969_v36 }
 0x660   :  { %v1751_v38 = vpop.f32.mrf.mxu1 }
 0x661   :  { %v976_v1 = vsub.f32 %v974_v37, %v888_v5 }
 0x663   :  { %v977_v40 = vpack.c.bf16 %v976_v1, %v975_v39 }
 0x665   :  { %1809 = vmatmul.mubr.bf16.vlgmr.msra.gmra.mxu0 %v977_v40 }
 0x67a   :  { %v1182_v41 = vpop.f32.mrf.mxu1 }
 0x67b   :  { %v1183_v42 = vadd.f32 %v1182_v41, %v1093_v29 }
 0x67c   :  { %v1790_v43 = vpop.f32.mrf.mxu1 }
 0x67e   :  { %v1185_v44 = vpop.f32.mrf.mxu1 }
 0x67f   :  { %v1186_v45 = vadd.f32 %v1185_v44, %v1096_v32 }
 0x680   :  { %v1791_v46 = vpop.f32.mrf.mxu1 }
 0x725   :  { %v1288_v47 = vpop.f32.mrf.mxu0 }
 0x726   :  { %v1295_v49 = vadd.f32 %v1288_v47, %v1183_v42 }
 0x727   :  { %v1810_v50 = vpop.f32.mrf.mxu0 }
 0x728   :  { %v1304_v51 = vadd.f32 %v1502_v48, %v1295_v49 }
 0x729   :  { %v1291_v52 = vpop.f32.mrf.mxu0 }
 0x72a   :  { %1306 = vst [vmem:[#allocation2] sm:$0xff] %v1304_v51  ;;  %v1296_v53 = vadd.f32 %v1291_v52, %v1186_v45 }
 0x72b   :  { %v1811_v54 = vpop.f32.mrf.mxu0 }
 0x72c   :  { %v1305_v55 = vadd.f32 %v1502_v48, %v1296_v53 }
 0x72e   :  { %1307 = vst [vmem:[#allocation2 + $0x8] sm:$0xff] %v1305_v55 }
 0x72f   :  { %1903 = shalt.err (!%p1900_p4)
}
 0x730   :  { %s1917_s7 = smov 128   ;;  %s1918_s27 = smov 8  }
 0x731   :  { %1319 = dma.vmem_to_hbm [thread:$0]  %s1314_s25, 256, %s2368_s8, [#allocation3], %s1917_s7, %s1917_s7, %s1918_s27  }
 0x732   :  { %1912 = dma.done.wait [#allocation3], 256  }
 0x733   :  { %1913 = vsyncadd [#allocation3], 4294967040 }
 0x734   :  { %1323 = vsyncpa [#allocation3], 1 }

</bundles_post_ra>
